<compile_context>
chip_gen: v5e
topology: v5e:2x2
jax: 0.10.0
libtpu: 0.0.40
codegen_flags: <defaults>
</compile_context>

<pallas_src>
import functools

import jax
import jax.numpy as jnp
from jax.experimental import pallas as pl
from jax.experimental.pallas import tpu as pltpu


def _mlp_softmax_kernel(x_ref, w1_ref, b1_ref, w2_ref, b2_ref, o_ref):
    # Layer 1: x @ W1 + b1, ReLU.  bf16 operands, f32 accumulation on the MXU.
    h = jnp.dot(x_ref[...], w1_ref[...], preferred_element_type=jnp.float32)
    h = jnp.maximum(h + b1_ref[...], 0.0)                     # f32 VPU

    # Layer 2: h @ W2 + b2.  Activations back to bf16 for the MXU, f32 accumulate.
    logits = jnp.dot(h.astype(w2_ref.dtype), w2_ref[...],
                     preferred_element_type=jnp.float32)
    logits = logits + b2_ref[...]

    # Numerically stable softmax over the action dim (all f32).
    m = jnp.max(logits, axis=-1, keepdims=True)
    e = jnp.exp(logits - m)                                   # EUP
    denom = jnp.sum(e, axis=-1, keepdims=True)
    # Exact reciprocal keeps per-row sums at 1.0 to ~1 ulp while avoiding a VALU divide.
    o_ref[...] = (e * pl.reciprocal(denom, approx=False)).astype(o_ref.dtype)
    # TODO(synk): if n_actions/batch grow, pad logits to 128 lanes (zero W2 columns,
    # -1e30 padded logits) so the final store is an unmasked lane-dense vst.


def prepare_params(w1, b1, w2, b2, compute_dtype=jnp.bfloat16):
    """One-time conversion from PyTorch nn.Linear layout ([out, in] weights, [out]
    biases, f32) to kernel layout. Do NOT call this per forward step."""
    return {
        "w1": jnp.asarray(w1).T.astype(compute_dtype),        # [input_size, hidden]
        "b1": jnp.asarray(b1, jnp.float32).reshape(1, -1),    # [1, hidden]
        "w2": jnp.asarray(w2).T.astype(compute_dtype),        # [hidden, n_actions]
        "b2": jnp.asarray(b2, jnp.float32).reshape(1, -1),    # [1, n_actions]
    }


def nn_forward(params, x, *, block_b=512):
    """softmax(relu(x @ W1 + b1) @ W2 + b2), softmax over dim=1.

    x: [B, input_size] (any float dtype); params: output of prepare_params."""
    w1, b1, w2, b2 = params["w1"], params["b1"], params["w2"], params["b2"]
    B = x.shape[0]
    in_size, hidden = w1.shape
    n_actions = w2.shape[1]

    x = x.astype(w1.dtype)   # bf16 feed for the MXU (single cheap convert, no layout copy)

    # Batch tile: full batch if small, otherwise a multiple-of-8 tile (TPU sublane rule).
    if B <= block_b:
        tb = B
    else:
        tb = max(8, (block_b // 8) * 8)
    grid = (pl.cdiv(B, tb),)

    bytes_accessed = (
        B * in_size * x.dtype.itemsize
        + w1.size * w1.dtype.itemsize + b1.size * 4
        + w2.size * w2.dtype.itemsize + b2.size * 4
        + B * n_actions * 4
    )
    cost = pl.CostEstimate(
        flops=2 * B * (in_size * hidden + hidden * n_actions),
        transcendentals=B * n_actions,
        bytes_accessed=bytes_accessed,
    )

    return pl.pallas_call(
        _mlp_softmax_kernel,
        out_shape=jax.ShapeDtypeStruct((B, n_actions), jnp.float32),
        grid=grid,
        in_specs=[
            pl.BlockSpec((tb, in_size), lambda i: (i, 0)),        # batch tile of x
            pl.BlockSpec((in_size, hidden), lambda i: (0, 0)),    # W1: VMEM-resident
            pl.BlockSpec((1, hidden), lambda i: (0, 0)),          # b1: VMEM-resident
            pl.BlockSpec((hidden, n_actions), lambda i: (0, 0)),  # W2: VMEM-resident
            pl.BlockSpec((1, n_actions), lambda i: (0, 0)),       # b2: VMEM-resident
        ],
        out_specs=pl.BlockSpec((tb, n_actions), lambda i: (i, 0)),
        compiler_params=pltpu.CompilerParams(
            dimension_semantics=("parallel",)),
        cost_estimate=cost,
    )(x, w1, b1, w2, b2)


def init_torch_params(key, input_size, n_actions, hidden=128):
    """Deterministic init mimicking torch.nn.Linear default (U[-1/sqrt(fan_in), +])."""
    k1, k2, k3, k4 = jax.random.split(key, 4)
    lim1 = 1.0 / jnp.sqrt(jnp.float32(input_size))
    lim2 = 1.0 / jnp.sqrt(jnp.float32(hidden))
    w1 = jax.random.uniform(k1, (hidden, input_size), jnp.float32, -lim1, lim1)
    b1 = jax.random.uniform(k2, (hidden,), jnp.float32, -lim1, lim1)
    w2 = jax.random.uniform(k3, (n_actions, hidden), jnp.float32, -lim2, lim2)
    b2 = jax.random.uniform(k4, (n_actions,), jnp.float32, -lim2, lim2)
    return w1, b1, w2, b2


if __name__ == "__main__":
    # Shapes consistent with a REINFORCE policy net (CartPole: obs=4, actions=2),
    # with a batch of environment states to exercise the batch grid axis.
    batch, input_size, n_actions = 128, 4, 2

    key = jax.random.PRNGKey(0)
    kx, kp = jax.random.split(key)
    x = jax.random.normal(kx, (batch, input_size), jnp.float32)
    w1, b1, w2, b2 = init_torch_params(kp, input_size, n_actions)
    params = prepare_params(w1, b1, w2, b2)     # one-time layout/dtype prep

    fwd = jax.jit(functools.partial(nn_forward, block_b=64))   # 64-row tiles -> grid=(2,)
    out = jax.block_until_ready(fwd(params, x))
    assert out.shape == (batch, n_actions)

    # Reference 1: same math as the kernel (bf16 matmul inputs, f32 accumulation).
    xb = x.astype(jnp.bfloat16)
    h = jnp.dot(xb, params["w1"], preferred_element_type=jnp.float32) + params["b1"]
    h = jnp.maximum(h, 0.0)
    logits = jnp.dot(h.astype(jnp.bfloat16), params["w2"],
                     preferred_element_type=jnp.float32) + params["b2"]
    ref_bf16 = jax.nn.softmax(logits, axis=1)
    assert jnp.allclose(out, ref_bf16, atol=2e-3, rtol=2e-3)

    # Reference 2: pure-f32 PyTorch semantics (loose tol covers bf16 input rounding).
    h32 = jnp.maximum(x @ w1.T + b1, 0.0)
    ref_f32 = jax.nn.softmax(h32 @ w2.T + b2, axis=1)
    assert jnp.allclose(out, ref_f32, atol=5e-2)

    # Rows are valid probability distributions.
    assert jnp.allclose(jnp.sum(out, axis=1), 1.0, atol=1e-5)

    print("KERNEL_OK")
</pallas_src>

<mosaic_0001>
module attributes {stable_mosaic.version = 11 : i64} {
  func.func @_mlp_softmax_kernel(%arg0: i32, %arg1: memref<64x4xbf16, #tpu.memory_space<vmem>>, %arg2: memref<4x128xbf16, #tpu.memory_space<vmem>>, %arg3: memref<1x128xf32, #tpu.memory_space<vmem>>, %arg4: memref<128x2xbf16, #tpu.memory_space<vmem>>, %arg5: memref<1x2xf32, #tpu.memory_space<vmem>>, %arg6: memref<64x2xf32, #tpu.memory_space<vmem>>) attributes {dimension_semantics = [#tpu.dimension_semantics<parallel>], iteration_bounds = array<i64: 2>, scalar_prefetch = 0 : i64, scratch_operands = 0 : i64, tpu.core_type = #tpu.core_type<tc>, window_params = [{transform_indices = @transform_0, window_bounds = array<i64: 64, 4>}, {pipeline_mode = #tpu.pipeline_mode<synchronous>, transform_indices = @transform_1, window_bounds = array<i64: 4, 128>}, {pipeline_mode = #tpu.pipeline_mode<synchronous>, transform_indices = @transform_2, window_bounds = array<i64: 1, 128>}, {pipeline_mode = #tpu.pipeline_mode<synchronous>, transform_indices = @transform_3, window_bounds = array<i64: 128, 2>}, {pipeline_mode = #tpu.pipeline_mode<synchronous>, transform_indices = @transform_4, window_bounds = array<i64: 1, 2>}, {transform_indices = @transform_5, window_bounds = array<i64: 64, 2>}]} {
    %c0 = arith.constant 0 : index
    %c0_0 = arith.constant 0 : index
    %0 = vector.load %arg1[%c0, %c0_0] : memref<64x4xbf16, #tpu.memory_space<vmem>>, vector<64x4xbf16>
    %c0_1 = arith.constant 0 : index
    %c0_2 = arith.constant 0 : index
    %1 = vector.load %arg2[%c0_1, %c0_2] : memref<4x128xbf16, #tpu.memory_space<vmem>>, vector<4x128xbf16>
    %cst = arith.constant dense<0.000000e+00> : vector<64x128xf32>
    %2 = tpu.matmul %0, %1, %cst {dimension_numbers = #tpu.dot_dimension_numbers<[1], [0], [0], [1], [0, 0, 1, 1], [], []>} : vector<64x4xbf16>, vector<4x128xbf16>, vector<64x128xf32> -> vector<64x128xf32>
    %c0_3 = arith.constant 0 : index
    %c0_4 = arith.constant 0 : index
    %3 = vector.load %arg3[%c0_3, %c0_4] : memref<1x128xf32, #tpu.memory_space<vmem>>, vector<1x128xf32>
    %4 = vector.broadcast %3 : vector<1x128xf32> to vector<64x128xf32>
    %5 = arith.addf %2, %4 : vector<64x128xf32>
    %cst_5 = arith.constant 0.000000e+00 : f32
    %6 = vector.broadcast %cst_5 : f32 to vector<64x128xf32>
    %7 = arith.maximumf %5, %6 : vector<64x128xf32>
    %8 = arith.truncf %7 : vector<64x128xf32> to vector<64x128xbf16>
    %c0_6 = arith.constant 0 : index
    %c0_7 = arith.constant 0 : index
    %9 = vector.load %arg4[%c0_6, %c0_7] : memref<128x2xbf16, #tpu.memory_space<vmem>>, vector<128x2xbf16>
    %cst_8 = arith.constant dense<0.000000e+00> : vector<64x2xf32>
    %10 = tpu.matmul %8, %9, %cst_8 {dimension_numbers = #tpu.dot_dimension_numbers<[1], [0], [0], [1], [0, 0, 1, 1], [], []>} : vector<64x128xbf16>, vector<128x2xbf16>, vector<64x2xf32> -> vector<64x2xf32>
    %c0_9 = arith.constant 0 : index
    %c0_10 = arith.constant 0 : index
    %11 = vector.load %arg5[%c0_9, %c0_10] : memref<1x2xf32, #tpu.memory_space<vmem>>, vector<1x2xf32>
    %12 = vector.broadcast %11 : vector<1x2xf32> to vector<64x2xf32>
    %13 = arith.addf %10, %12 : vector<64x2xf32>
    %cst_11 = arith.constant dense<0xFF800000> : vector<64xf32>
    %14 = vector.multi_reduction <maximumf>, %13, %cst_11 [1] : vector<64x2xf32> to vector<64xf32>
    %15 = vector.shape_cast %14 : vector<64xf32> to vector<64x1xf32>
    %16 = vector.broadcast %15 : vector<64x1xf32> to vector<64x2xf32>
    %17 = arith.subf %13, %16 : vector<64x2xf32>
    %18 = math.exp %17 : vector<64x2xf32>
    %cst_12 = arith.constant dense<0.000000e+00> : vector<64xf32>
    %19 = vector.multi_reduction <add>, %18, %cst_12 [1] : vector<64x2xf32> to vector<64xf32>
    %20 = vector.shape_cast %19 : vector<64xf32> to vector<64x1xf32>
    %21 = tpu.reciprocal %20 : vector<64x1xf32> -> vector<64x1xf32>
    %22 = vector.broadcast %21 : vector<64x1xf32> to vector<64x2xf32>
    %23 = arith.mulf %18, %22 : vector<64x2xf32>
    %c0_13 = arith.constant 0 : index
    %c0_14 = arith.constant 0 : index
    %24 = vector.load %arg6[%c0_13, %c0_14] : memref<64x2xf32, #tpu.memory_space<vmem>>, vector<64x2xf32>
    tpu.vector_store %arg6[%c0_13, %c0_14], %23 {strides = array<i32>} : memref<64x2xf32, #tpu.memory_space<vmem>>, vector<64x2xf32>,
    return
  }
  func.func @transform_0(%arg0: i32) -> (i32, i32) {
    %c0_i32 = arith.constant 0 : i32
    %c0_i32_0 = arith.constant 0 : i32
    return %arg0, %c0_i32 : i32, i32
  }
  func.func @transform_1(%arg0: i32) -> (i32, i32) {
    %c0_i32 = arith.constant 0 : i32
    %c0_i32_0 = arith.constant 0 : i32
    %c0_i32_1 = arith.constant 0 : i32
    return %c0_i32, %c0_i32_0 : i32, i32
  }
  func.func @transform_2(%arg0: i32) -> (i32, i32) {
    %c0_i32 = arith.constant 0 : i32
    %c0_i32_0 = arith.constant 0 : i32
    %c0_i32_1 = arith.constant 0 : i32
    return %c0_i32, %c0_i32_0 : i32, i32
  }
  func.func @transform_3(%arg0: i32) -> (i32, i32) {
    %c0_i32 = arith.constant 0 : i32
    %c0_i32_0 = arith.constant 0 : i32
    %c0_i32_1 = arith.constant 0 : i32
    return %c0_i32, %c0_i32_0 : i32, i32
  }
  func.func @transform_4(%arg0: i32) -> (i32, i32) {
    %c0_i32 = arith.constant 0 : i32
    %c0_i32_0 = arith.constant 0 : i32
    %c0_i32_1 = arith.constant 0 : i32
    return %c0_i32, %c0_i32_0 : i32, i32
  }
  func.func @transform_5(%arg0: i32) -> (i32, i32) {
    %c0_i32 = arith.constant 0 : i32
    %c0_i32_0 = arith.constant 0 : i32
    return %arg0, %c0_i32 : i32, i32
  }
}

</mosaic_0001>

<bundles_post_ra>
// kernel: nn_forward.1
= control target key start
LH: loop header
LB: loop body
LE: loop exit
PB: predicated region body
PF: predicated region fallthrough
CT: control target
= control target key end

     0   :  { %s846_s18 = smov 0   ;;  %s970_s0 = inlined_call_operand.vmem [shape: bf16[128,4], index: 0, kind: input, shape index: {}]   ;;  %s971_s1 = inlined_call_operand.vmem [shape: bf16[4,128], index: 1, kind: input, shape index: {}]   ;;  %s972_s2 = inlined_call_operand.vmem [shape: f32[1,128], index: 2, kind: input, shape index: {}]   ;;  %s973_s3 = inlined_call_operand.vmem [shape: bf16[128,2], index: 3, kind: input, shape index: {}]   ;;  %s974_s4 = inlined_call_operand.vmem [shape: f32[1,2], index: 4, kind: input, shape index: {}]   ;;  %s975_s5 = inlined_call_operand.vmem [shape: f32[128,2], index: 5, kind: output, shape index: {}]  }
   0x1 LB: > { %s674_s19 = sadd.s32 4294967295, %s814_s18   ;;  %p678_p0 = scmp.ge.s32.totalorder %s814_s18, 1  ;;  %s814_s18 = sphi %s846_s18, %s15_s18  }
   0x2   : > { %p188_p1 = scmp.lt.s32.totalorder %s814_s18, 3 }
   0x4   : > { %p189_p2 = pnand %p678_p0, %p188_p1 }
   0x5   : > { %s679_s22 = sshll.u32 (!%p189_p2), %s674_s19, 3 }
   0x6   : > { %192 = sbr.rel (%p189_p2) target bundleno = 601 (0x259), region = 40  ;;  %p217_p3 = scmp.lt.s32.totalorder (!%p189_p2), %s679_s22, 15 }
   0xb   : > { %v237_v0 = vld [vmem:[%s971_s1] sm:$0x3]  ;;  %vm275_vm0 = vcmask 1041408   ;;  %s977_s22 = smov (!%p217_p3, %s679_s22), 15  ;;  %vm262_vm1 = vcmask 31744   ;;  %v748_v4 = vld [vmem:[%s973_s3 + $0x38] sm:$0xff] }
   0xc   : > { %v277_v1 = vsel %vm275_vm0, %v237_v0, 0  ;;  %s680_s23 = sshll.u32 %s977_s22, 2  ;;  %v747_v5 = vld [vmem:[%s973_s3 + $0x30] sm:$0xff]  ;;  %750 = vmatpush.bf16.msra.mxu1 %v748_v4  ;;  %751 = vmatpush.bf16.msra.mxu2 %v748_v4  ;;  %v746_v6 = vld [vmem:[%s973_s3 + $0x28] sm:$0xff]  ;;  %v745_v7 = vld [vmem:[%s973_s3 + $0x20] sm:$0xff]  ;;  %vm417_vm2 = vcmask 15360  }
   0xd   : > { %286 = vmatpush.bf16.msra.mxu0 %v277_v1  ;;  %749 = vmatpush.bf16.msra.mxu3 %v277_v1  ;;  %s220_s26 = scalar_lea.vmem %s970_s0, %s680_s23  ;;  %v744_v10 = vld [vmem:[%s973_s3 + $0x18] sm:$0xff]  ;;  %v743_v11 = vld [vmem:[%s973_s3 + $0x10] sm:$0xff]  ;;  %v742_v12 = vld [vmem:[%s973_s3 + $0x8] sm:$0xff]  ;;  %s682_s24 = sshll.u32 %s977_s22, 3 }
   0xe   : > { %v737_v2 = vld [vmem:[%s220_s26] sm:$0xff]  ;;  %v738_v3 = vld [vmem:[%s220_s26 + $0x8] sm:$0xff]  ;;  %v739_v8 = vld [vmem:[%s220_s26 + $0x10] sm:$0xff]  ;;  %s941_s27 = scalar_lea.vmem %s975_s5, %s682_s24 }
   0xf   : > { %v740_v9 = vld [vmem:[%s220_s26 + $0x18] sm:$0xff]  ;;  %v741_v13 = vld [vmem:[%s973_s3] sm:$0xff] }
  0x10   : > { %699 = vmatmul.msk.bf16.vlgmr.msra.gmra.mxu0 %vm262_vm1, %v737_v2  ;;  %700 = vmatmul.msk.bf16.vlgmr.msra.gmra.mxu3 %vm262_vm1, %v738_v3  ;;  %v774_v15 = vld [vmem:[%s972_s2] ss:$0 sm:$0xff] }
  0x11   : > { %388 = vmatpush.bf16.msrb.mxu0 %v748_v4  ;;  %752 = vmatpush.bf16.msra.mxu1 %v747_v5  ;;  %v775_v43 = vld [vmem:[%s974_s4] ss:$0 sm:$0xff] }
  0x12   : > { %753 = vmatpush.bf16.msra.mxu2 %v747_v5 }
  0x15   : > { %389 = vmatpush.bf16.msrb.mxu0 %v747_v5  ;;  %754 = vmatpush.bf16.msra.mxu1 %v746_v6 }
  0x16   : > { %755 = vmatpush.bf16.msra.mxu2 %v746_v6 }
  0x19   : > { %390 = vmatpush.bf16.msrb.mxu0 %v746_v6  ;;  %756 = vmatpush.bf16.msra.mxu1 %v745_v7 }
  0x1a   : > { %757 = vmatpush.bf16.msra.mxu2 %v745_v7 }
  0x1d   : > { %391 = vmatpush.bf16.msrb.mxu0 %v745_v7  ;;  %758 = vmatpush.bf16.msra.mxu1 %v744_v10 }
  0x1e   : > { %759 = vmatpush.bf16.msra.mxu2 %v744_v10 }
  0x20   : > { %701 = vmatmul.msk.bf16.gmra.mxu3 %vm262_vm1, %v739_v8 }
  0x21   : > { %392 = vmatpush.bf16.msrb.mxu0 %v744_v10  ;;  %760 = vmatpush.bf16.msra.mxu1 %v743_v11 }
  0x22   : > { %761 = vmatpush.bf16.msra.mxu2 %v743_v11 }
  0x25   : > { %393 = vmatpush.bf16.msrb.mxu0 %v743_v11  ;;  %762 = vmatpush.bf16.msra.mxu1 %v742_v12 }
  0x26   : > { %763 = vmatpush.bf16.msra.mxu2 %v742_v12 }
  0x29   : > { %394 = vmatpush.bf16.msrb.mxu0 %v742_v12  ;;  %764 = vmatpush.bf16.msra.mxu1 %v741_v13 }
  0x2a   : > { %765 = vmatpush.bf16.msra.mxu2 %v741_v13 }
  0x2d   : > { %395 = vmatpush.bf16.msrb.mxu0 %v741_v13 }
  0x30   : > { %702 = vmatmul.msk.bf16.gmra.mxu3 %vm262_vm1, %v740_v9 }
  0x8d   : > { %v288_v14 = vpop.f32.mrf.mxu0 }
  0x8e   : > { %v289_v16 = vadd.f32 %v774_v15, %v288_v14 }
  0x90   : > { %v308_v19 = vmax.f32 %v289_v16, 0.0 }
  0x93   : > { %v293_v17 = vpop.f32.mrf.mxu3 }
  0x94   : > { %v294_v22 = vadd.f32 %v774_v15, %v293_v17 }
  0x95   : > { %v290_v18 = vpop.f32.mrf.mxu0 }
  0x96   : > { %v291_v20 = vadd.f32 %v774_v15, %v290_v18  ;;  %v310_v26 = vmax.f32 %v294_v22, 0.0 }
  0x98   : > { %v309_v21 = vmax.f32 %v291_v20, 0.0 }
  0x9a   : > { %v316_v23 = vpack.c.bf16 %v309_v21, %v308_v19 }
  0x9b   : > { %v295_v24 = vpop.f32.mrf.mxu3 }
  0x9c   : > { %v296_v25 = vadd.f32 %v774_v15, %v295_v24  ;;  %396 = vmatmul.bf16.vlgmr.msrb.gmra.mxu0 %v316_v23 }
  0x9e   : > { %v311_v27 = vmax.f32 %v296_v25, 0.0 }
  0xa0   : > { %v317_v28 = vpack.c.bf16 %v311_v27, %v310_v26 }
  0xa2   : > { %401 = vmatmul.bf16.vlgmr.msra.gmra.mxu1 %v317_v28 }
  0xa3   : > { %v298_v29 = vpop.f32.mrf.mxu3 }
  0xa4   : > { %v299_v30 = vadd.f32 %v774_v15, %v298_v29 }
  0xa6   : > { %v312_v33 = vmax.f32 %v299_v30, 0.0 }
  0xab   : > { %v300_v31 = vpop.f32.mrf.mxu3 }
  0xac   : > { %v301_v32 = vadd.f32 %v774_v15, %v300_v31 }
  0xae   : > { %v313_v34 = vmax.f32 %v301_v32, 0.0 }
  0xb0   : > { %v318_v35 = vpack.c.bf16 %v313_v34, %v312_v33 }
  0xb2   : > { %406 = vmatmul.bf16.vlgmr.msra.gmra.mxu2 %v318_v35 }
  0xb3   : > { %v303_v36 = vpop.f32.mrf.mxu3 }
  0xb4   : > { %v304_v37 = vadd.f32 %v774_v15, %v303_v36 }
  0xb6   : > { %v314_v40 = vmax.f32 %v304_v37, 0.0 }
  0xbb   : > { %v305_v38 = vpop.f32.mrf.mxu3 }
  0xbc   : > { %v306_v39 = vadd.f32 %v774_v15, %v305_v38 }
  0xbe   : > { %v315_v41 = vmax.f32 %v306_v39, 0.0 }
  0xc0   : > { %v319_v42 = vpack.c.bf16 %v315_v41, %v314_v40 }
  0xc2   : > { %411 = vmatmul.bf16.gmra.mxu2 %v319_v42 }
 0x119   : > { %v397_v44 = vpop.f32.mrf.mxu0 }
 0x11a   : > { %v398_v45 = vadd.f32 %v775_v43, %v397_v44 }
 0x11c   : > { %v418_v46 = vsel %vm417_vm2, %v398_v45, -inf }
 0x11d   : > { %419 = vmax.xlane.f32.xlu0 %v418_v46 }
 0x11f   : > { %v402_v47 = vpop.f32.mrf.mxu1 }
 0x120   : > { %v403_v48 = vadd.f32 %v775_v43, %v402_v47 }
 0x121   : > { %v399_v49 = vpop.f32.mrf.mxu0 }
 0x122   : > { %v400_v50 = vadd.f32 %v775_v43, %v399_v49  ;;  %v424_v51 = vsel %vm417_vm2, %v403_v48, -inf }
 0x123   : > { %425 = vmax.xlane.f32.xlu1 %v424_v51 }
 0x124   : > { %v421_v52 = vsel %vm417_vm2, %v400_v50, -inf }
 0x125   : > { %422 = vmax.xlane.f32.xlu0 %v421_v52 }
 0x127   : > { %v404_v53 = vpop.f32.mrf.mxu1 }
 0x128   : > { %v405_v54 = vadd.f32 %v775_v43, %v404_v53 }
 0x12a   : > { %v427_v55 = vsel %vm417_vm2, %v405_v54, -inf }
 0x12b   : > { %428 = vmax.xlane.f32.xlu1 %v427_v55 }
 0x135   : > { %v407_v56 = vpop.f32.mrf.mxu2 }
 0x136   : > { %v408_v57 = vadd.f32 %v775_v43, %v407_v56 }
 0x138   : > { %v430_v58 = vsel %vm417_vm2, %v408_v57, -inf }
 0x139   : > { %431 = vmax.xlane.f32.xlu2 %v430_v58 }
 0x13d   : > { %v409_v59 = vpop.f32.mrf.mxu2 }
 0x13e   : > { %v410_v60 = vadd.f32 %v775_v43, %v409_v59 }
 0x140   : > { %v433_v61 = vsel %vm417_vm2, %v410_v60, -inf }
 0x141   : > { %434 = vmax.xlane.f32.xlu2 %v433_v61 }
 0x145   : > { %v412_v62 = vpop.f32.mrf.mxu2 }
 0x146   : > { %v413_v63 = vadd.f32 %v775_v43, %v412_v62 }
 0x148   : > { %v436_v0 = vsel %vm417_vm2, %v413_v63, -inf }
 0x149   : > { %437 = vmax.xlane.f32.xlu0 %v436_v0 }
 0x14d   : > { %v414_v1 = vpop.f32.mrf.mxu2 }
 0x14e   : > { %v415_v2 = vadd.f32 %v775_v43, %v414_v1 }
 0x150   : > { %v439_v3 = vsel %vm417_vm2, %v415_v2, -inf }
 0x151   : > { %440 = vmax.xlane.f32.xlu1 %v439_v3 }
 0x190   : > { %v420_v4 = vpop.xlane.xlu0 %419 }
 0x191   : > { %v442_v5 = vsub.f32 %v398_v45, %v420_v4 }
 0x193   : > { %v450_v6 = vmul.f32 1.442695, %v442_v5 }
 0x195   : > { %776 = vpow2.f32 %v450_v6 }
 0x196   : > { %v426_v7 = vpop.xlane.xlu1 %425 }
 0x197   : > { %v444_v8 = vsub.f32 %v403_v48, %v426_v7 }
 0x198   : > { %v423_v9 = vpop.xlane.xlu0 %422 }
 0x199   : > { %v454_v10 = vmul.f32 1.442695, %v444_v8  ;;  %v443_v11 = vsub.f32 %v400_v50, %v423_v9 }
 0x19b   : > { %v905_v12 = vpop.eup %776  ;;  %778 = vpow2.f32 %v454_v10  ;;  %v452_v13 = vmul.f32 1.442695, %v443_v11 }
 0x19c   : > { %v466_v14 = vsel %vm417_vm2, %v905_v12, 0.0 }
 0x19d   : > { %780 = vpow2.f32 %v452_v13  ;;  %467 = vadd.xlane.f32.xlu2 %v466_v14 }
 0x19e   : > { %v429_v15 = vpop.xlane.xlu1 %428 }
 0x19f   : > { %v445_v16 = vsub.f32 %v405_v54, %v429_v15 }
 0x1a1   : > { %v909_v17 = vpop.eup %778  ;;  %v456_v18 = vmul.f32 1.442695, %v445_v16 }
 0x1a2   : > { %v472_v19 = vsel %vm417_vm2, %v909_v17, 0.0 }
 0x1a3   : > { %v913_v20 = vpop.eup %780  ;;  %782 = vpow2.f32 %v456_v18  ;;  %473 = vadd.xlane.f32.xlu1 %v472_v19 }
 0x1a4   : > { %v469_v21 = vsel %vm417_vm2, %v913_v20, 0.0 }
 0x1a5   : > { %470 = vadd.xlane.f32.xlu0 %v469_v21 }
 0x1a9   : > { %v917_v22 = vpop.eup %782 }
 0x1aa   : > { %v475_v23 = vsel %vm417_vm2, %v917_v22, 0.0 }
 0x1ab   : > { %476 = vadd.xlane.f32.xlu2 %v475_v23 }
 0x1ac   : > { %v432_v24 = vpop.xlane.xlu2 %431 }
 0x1ad   : > { %v446_v25 = vsub.f32 %v408_v57, %v432_v24 }
 0x1af   : > { %v458_v26 = vmul.f32 1.442695, %v446_v25 }
 0x1b1   : > { %784 = vpow2.f32 %v458_v26 }
 0x1b4   : > { %v435_v27 = vpop.xlane.xlu2 %434 }
 0x1b5   : > { %v447_v28 = vsub.f32 %v410_v60, %v435_v27 }
 0x1b7   : > { %v921_v29 = vpop.eup %784  ;;  %v460_v30 = vmul.f32 1.442695, %v447_v28 }
 0x1b8   : > { %v478_v31 = vsel %vm417_vm2, %v921_v29, 0.0 }
 0x1b9   : > { %786 = vpow2.f32 %v460_v30  ;;  %479 = vadd.xlane.f32.xlu0 %v478_v31 }
 0x1bc   : > { %v438_v32 = vpop.xlane.xlu0 %437 }
 0x1bd   : > { %v448_v33 = vsub.f32 %v413_v63, %v438_v32 }
 0x1bf   : > { %v925_v34 = vpop.eup %786  ;;  %v462_v35 = vmul.f32 1.442695, %v448_v33 }
 0x1c0   : > { %v481_v36 = vsel %vm417_vm2, %v925_v34, 0.0 }
 0x1c1   : > { %788 = vpow2.f32 %v462_v35  ;;  %482 = vadd.xlane.f32.xlu1 %v481_v36 }
 0x1c4   : > { %v441_v37 = vpop.xlane.xlu1 %440 }
 0x1c5   : > { %v449_v38 = vsub.f32 %v415_v2, %v441_v37 }
 0x1c7   : > { %v929_v39 = vpop.eup %788  ;;  %v464_v40 = vmul.f32 1.442695, %v449_v38 }
 0x1c8   : > { %v484_v41 = vsel %vm417_vm2, %v929_v39, 0.0 }
 0x1c9   : > { %790 = vpow2.f32 %v464_v40  ;;  %485 = vadd.xlane.f32.xlu2 %v484_v41 }
 0x1cf   : > { %v933_v42 = vpop.eup %790 }
 0x1d0   : > { %v487_v43 = vsel %vm417_vm2, %v933_v42, 0.0 }
 0x1d1   : > { %488 = vadd.xlane.f32.xlu0 %v487_v43 }
 0x210   : > { %v468_v44 = vpop.xlane.xlu2 %467 }
 0x211   : > { %792 = vrcp.f32 %v468_v44  ;;  %v501_v50 = vand.u32 2147483648, %v468_v44  ;;  %v499_v52 = vand.u32 2147483647, %v468_v44  ;;  %vm495_vm4 = vweird.f32 %v468_v44 }
 0x213   : > { %v502_v58 = vor.u32 1.1754944e-38, %v501_v50  ;;  %vm500_vm6 = vcmp.eq.f32.partialorder %v499_v52, 8.507059e+37 }
 0x216   : > { %v474_v45 = vpop.xlane.xlu1 %473 }
 0x217   : > { %v793_v46 = vpop.eup %792  ;;  %794 = vrcp.f32 %v474_v45  ;;  %v527_v63 = vand.u32 2147483647, %v474_v45  ;;  %v529_v0 = vand.u32 2147483648, %v474_v45  ;;  %vm523_vm8 = vweird.f32 %v474_v45 }
 0x218   : > { %v491_v47 = vmul.f32 %v793_v46, %v468_v44  ;;  %v471_v48 = vpop.xlane.xlu0 %470  ;;  %vm496_vm3 = vweird.f32 %v793_v46 }
 0x219   : > { %796 = vrcp.f32 %v471_v48  ;;  %vm497_vm5 = vmor %vm495_vm4, %vm496_vm3  ;;  %v515_v4 = vand.u32 2147483648, %v471_v48  ;;  %v513_v7 = vand.u32 2147483647, %v471_v48  ;;  %vm528_vm11 = vcmp.eq.f32.partialorder %v527_v63, 8.507059e+37 }
 0x21a   : > { %v492_v49 = vsub.f32 1.0, %v491_v47  ;;  %v530_v9 = vor.u32 1.1754944e-38, %v529_v0  ;;  %vm509_vm12 = vweird.f32 %v471_v48 }
 0x21b   : > { %v516_v14 = vor.u32 1.1754944e-38, %v515_v4  ;;  %vm514_vm14 = vcmp.eq.f32.partialorder %v513_v7, 8.507059e+37 }
 0x21c   : > { %v493_v51 = vmul.f32 %v793_v46, %v492_v49 }
 0x21d   : > { %v795_v53 = vpop.eup %794 }
 0x21e   : > { %v494_v54 = vadd.f32 %v793_v46, %v493_v51  ;;  %v519_v55 = vmul.f32 %v795_v53, %v474_v45  ;;  %v477_v56 = vpop.xlane.xlu2 %476  ;;  %vm524_vm7 = vweird.f32 %v795_v53 }
 0x21f   : > { %v797_v57 = vpop.eup %796  ;;  %798 = vrcp.f32 %v477_v56  ;;  %vm525_vm10 = vmor %vm523_vm8, %vm524_vm7  ;;  %v543_v21 = vand.u32 2147483648, %v477_v56  ;;  %v541_v25 = vand.u32 2147483647, %v477_v56  ;;  %vm537_vm0 = vweird.f32 %v477_v56 }
 0x220   : > { %v498_v59 = vsel %vm497_vm5, %v793_v46, %v494_v54  ;;  %v520_v60 = vsub.f32 1.0, %v519_v55  ;;  %v505_v61 = vmul.f32 %v797_v57, %v471_v48  ;;  %vm510_vm9 = vweird.f32 %v797_v57 }
 0x221   : > { %v503_v62 = vsel %vm500_vm6, %v502_v58, %v498_v59  ;;  %vm511_vm13 = vmor %vm509_vm12, %vm510_vm9  ;;  %vm542_vm3 = vcmp.eq.f32.partialorder %v541_v25, 8.507059e+37 }
 0x222   : > { %v602_v1 = vmul.f32 %v905_v12, %v503_v62  ;;  %v521_v2 = vmul.f32 %v795_v53, %v520_v60  ;;  %v506_v3 = vsub.f32 1.0, %v505_v61 }
 0x224   : > { %610 = vst.msk [vmem:[%s941_s27] sm:$0xff] %vm417_vm2, %v602_v1  ;;  %v522_v5 = vadd.f32 %v795_v53, %v521_v2  ;;  %v507_v6 = vmul.f32 %v797_v57, %v506_v3 }
 0x225   : > { %v799_v8 = vpop.eup %798 }
 0x226   : > { %v526_v10 = vsel %vm525_vm10, %v795_v53, %v522_v5  ;;  %v508_v11 = vadd.f32 %v797_v57, %v507_v6  ;;  %v533_v12 = vmul.f32 %v799_v8, %v477_v56  ;;  %vm538_vm15 = vweird.f32 %v799_v8 }
 0x227   : > { %v531_v13 = vsel %vm528_vm11, %v530_v9, %v526_v10  ;;  %vm539_vm1 = vmor %vm537_vm0, %vm538_vm15 }
 0x228   : > { %v604_v15 = vmul.f32 %v909_v17, %v531_v13  ;;  %v512_v16 = vsel %vm511_vm13, %v797_v57, %v508_v11  ;;  %v534_v18 = vsub.f32 1.0, %v533_v12  ;;  %v544_v17 = vor.u32 1.1754944e-38, %v543_v21 }
 0x229   : > { %v517_v19 = vsel %vm514_vm14, %v516_v14, %v512_v16 }
 0x22a   : > { %612 = vst.msk [vmem:[%s941_s27 + $0x10] sm:$0xff] %vm417_vm2, %v604_v15  ;;  %v603_v23 = vmul.f32 %v913_v20, %v517_v19  ;;  %v535_v24 = vmul.f32 %v799_v8, %v534_v18 }
 0x22c   : > { %611 = vst.msk [vmem:[%s941_s27 + $0x8] sm:$0xff] %vm417_vm2, %v603_v23  ;;  %v536_v26 = vadd.f32 %v799_v8, %v535_v24  ;;  %v480_v27 = vpop.xlane.xlu0 %479 }
 0x22d   : > { %800 = vrcp.f32 %v480_v27  ;;  %v557_v36 = vand.u32 2147483648, %v480_v27  ;;  %v555_v38 = vand.u32 2147483647, %v480_v27  ;;  %vm551_vm5 = vweird.f32 %v480_v27 }
 0x22e   : > { %v540_v28 = vsel %vm539_vm1, %v799_v8, %v536_v26 }
 0x22f   : > { %v545_v30 = vsel %vm542_vm3, %v544_v17, %v540_v28  ;;  %v558_v43 = vor.u32 1.1754944e-38, %v557_v36  ;;  %vm556_vm7 = vcmp.eq.f32.partialorder %v555_v38, 8.507059e+37 }
 0x230   : > { %v605_v31 = vmul.f32 %v917_v22, %v545_v30 }
 0x232   : > { %613 = vst.msk [vmem:[%s941_s27 + $0x18] sm:$0xff] %vm417_vm2, %v605_v31 }
 0x233   : > { %v801_v32 = vpop.eup %800 }
 0x234   : > { %v547_v20 = vmul.f32 %v801_v32, %v480_v27  ;;  %v483_v33 = vpop.xlane.xlu1 %482  ;;  %vm552_vm4 = vweird.f32 %v801_v32 }
 0x235   : > { %802 = vrcp.f32 %v483_v33  ;;  %vm553_vm6 = vmor %vm551_vm5, %vm552_vm4  ;;  %v571_v49 = vand.u32 2147483648, %v483_v33  ;;  %v569_v51 = vand.u32 2147483647, %v483_v33  ;;  %vm565_vm9 = vweird.f32 %v483_v33 }
 0x236   : > { %v548_v35 = vsub.f32 1.0, %v547_v20 }
 0x237   : > { %v572_v54 = vor.u32 1.1754944e-38, %v571_v49  ;;  %vm570_vm11 = vcmp.eq.f32.partialorder %v569_v51, 8.507059e+37 }
 0x238   : > { %v549_v37 = vmul.f32 %v801_v32, %v548_v35 }
 0x23a   : > { %v550_v40 = vadd.f32 %v801_v32, %v549_v37 }
 0x23b   : > { %v803_v41 = vpop.eup %802 }
 0x23c   : > { %v554_v44 = vsel %vm553_vm6, %v801_v32, %v550_v40  ;;  %v561_v22 = vmul.f32 %v803_v41, %v483_v33  ;;  %v486_v45 = vpop.xlane.xlu2 %485  ;;  %vm566_vm8 = vweird.f32 %v803_v41 }
 0x23d   : > { %v559_v46 = vsel %vm556_vm7, %v558_v43, %v554_v44  ;;  %804 = vrcp.f32 %v486_v45  ;;  %vm567_vm10 = vmor %vm565_vm9, %vm566_vm8  ;;  %v585_v60 = vand.u32 2147483648, %v486_v45  ;;  %v583_v62 = vand.u32 2147483647, %v486_v45 }
 0x23e   : > { %v606_v47 = vmul.f32 %v921_v29, %v559_v46  ;;  %v562_v48 = vsub.f32 1.0, %v561_v22  ;;  %vm579_vm13 = vweird.f32 %v486_v45 }
 0x23f   : > { %v586_v1 = vor.u32 1.1754944e-38, %v585_v60  ;;  %vm584_vm15 = vcmp.eq.f32.partialorder %v583_v62, 8.507059e+37 }
 0x240   : > { %614 = vst.msk [vmem:[%s941_s27 + $0x20] sm:$0xff] %vm417_vm2, %v606_v47  ;;  %v563_v50 = vmul.f32 %v803_v41, %v562_v48 }
 0x242   : > { %v564_v52 = vadd.f32 %v803_v41, %v563_v50 }
 0x243   : > { %v805_v53 = vpop.eup %804 }
 0x244   : > { %v568_v55 = vsel %vm567_vm10, %v803_v41, %v564_v52  ;;  %v575_v56 = vmul.f32 %v805_v53, %v486_v45  ;;  %v489_v57 = vpop.xlane.xlu0 %488  ;;  %vm580_vm12 = vweird.f32 %v805_v53 }
 0x245   : > { %v573_v58 = vsel %vm570_vm11, %v572_v54, %v568_v55  ;;  %806 = vrcp.f32 %v489_v57  ;;  %vm581_vm14 = vmor %vm579_vm13, %vm580_vm12  ;;  %v599_v6 = vand.u32 2147483648, %v489_v57  ;;  %v597_v8 = vand.u32 2147483647, %v489_v57 }
 0x246   : > { %v607_v29 = vmul.f32 %v925_v34, %v573_v58  ;;  %v576_v59 = vsub.f32 1.0, %v575_v56  ;;  %vm593_vm1 = vweird.f32 %v489_v57 }
 0x247   : > { %v600_v10 = vor.u32 1.1754944e-38, %v599_v6  ;;  %vm598_vm4 = vcmp.eq.f32.partialorder %v597_v8, 8.507059e+37 }
 0x248   : > { %615 = vst.msk [vmem:[%s941_s27 + $0x28] sm:$0xff] %vm417_vm2, %v607_v29  ;;  %v577_v61 = vmul.f32 %v805_v53, %v576_v59 }
 0x24a   : > { %v578_v63 = vadd.f32 %v805_v53, %v577_v61 }
 0x24b   : > { %v807_v0 = vpop.eup %806 }
 0x24c   : > { %v582_v2 = vsel %vm581_vm14, %v805_v53, %v578_v63  ;;  %v589_v3 = vmul.f32 %v807_v0, %v489_v57  ;;  %vm594_vm0 = vweird.f32 %v807_v0 }
 0x24d   : > { %v587_v4 = vsel %vm584_vm15, %v586_v1, %v582_v2  ;;  %vm595_vm3 = vmor %vm593_vm1, %vm594_vm0 }
 0x24e   : > { %v608_v34 = vmul.f32 %v929_v39, %v587_v4  ;;  %v590_v5 = vsub.f32 1.0, %v589_v3 }
 0x250   : > { %616 = vst.msk [vmem:[%s941_s27 + $0x30] sm:$0xff] %vm417_vm2, %v608_v34  ;;  %v591_v7 = vmul.f32 %v807_v0, %v590_v5 }
 0x252   : > { %v592_v9 = vadd.f32 %v807_v0, %v591_v7 }
 0x254   : > { %v596_v11 = vsel %vm595_vm3, %v807_v0, %v592_v9 }
 0x255   : > { %v601_v12 = vsel %vm598_vm4, %v600_v10, %v596_v11 }
 0x256   : > { %v609_v13 = vmul.f32 %v933_v42, %v601_v12 }
 0x258   : > { %617 = vst.msk [vmem:[%s941_s27 + $0x38] sm:$0xff] %vm417_vm2, %v609_v13 }
 0x259 PF: > { %s15_s18 = sadd.s32 1, %s814_s18  }
 0x25a   : > { %p12_p4 = scmp.ge.s32.totalorder %s15_s18, 4  }
 0x25c   :  { %14 = sbr.rel (!%p12_p4) target bundleno = 1 (0x1), region = 70 }

</bundles_post_ra>
